<compile_context>
chip_gen: v5e
topology: v5e:2x2
jax: 0.10.0
libtpu: 0.0.40
codegen_flags: <defaults>
</compile_context>

<pallas_src>
import jax
import jax.numpy as jnp
from jax.experimental import pallas as pl
from jax.experimental.pallas import tpu as pltpu

HIDDEN = 128
LANE = 128


def _round_up(x, m):
    return ((x + m - 1) // m) * m


def _cdiv(a, b):
    return (a + b - 1) // b


def value_net_kernel(x_ref, w1_ref, b1_ref, w2_ref, b2_ref, w3_ref, b3_ref,
                     o_ref):
    # fc1 + relu (bf16 operands, f32 accumulation on the MXU; x is cast
    # in-kernel so its HBM read stays a single pipelined f32 DMA).
    x = x_ref[...].astype(jnp.bfloat16)
    h1 = jnp.dot(x, w1_ref[...], preferred_element_type=jnp.float32)
    h1 = jnp.maximum(h1 + b1_ref[...], 0.0)
    # fc2 + relu
    h2 = jnp.dot(h1.astype(jnp.bfloat16), w2_ref[...],
                 preferred_element_type=jnp.float32)
    h2 = jnp.maximum(h2 + b2_ref[...], 0.0)            # (TB, 128) f32

    # fc3, lane-dense output: o[r, c] = sum_k h2[r*128 + c, k] * w3[k] + b3.
    # Per 128-row chunk: one 128x128 XLU transpose + a (1,128)x(128,128) MXU
    # matmul; each store is a full 128-lane row (no masked lane-sparse vst).
    w3 = w3_ref[...]                                    # (1, 128) f32
    b3 = b3_ref[...]                                    # (1, 1)   f32
    n_chunks = o_ref.shape[0]                           # TB // 128 (static)
    for r in range(n_chunks):
        h2_c = h2[r * LANE:(r + 1) * LANE, :]           # (128, 128) f32
        v = jnp.dot(w3, h2_c.T, preferred_element_type=jnp.float32)  # (1,128)
        o_ref[pl.ds(r, 1), :] = v + b3


def init_params(key, state_dim):
    """Deterministic init mimicking PyTorch nn.Linear default (uniform +-1/sqrt(fan_in))."""
    ks = jax.random.split(key, 6)

    def lin(kw, kb, fan_in, fan_out):
        bound = 1.0 / jnp.sqrt(jnp.float32(fan_in))
        w = jax.random.uniform(kw, (fan_in, fan_out), jnp.float32, -bound, bound)
        b = jax.random.uniform(kb, (1, fan_out), jnp.float32, -bound, bound)
        return w, b

    w1, b1 = lin(ks[0], ks[1], state_dim, HIDDEN)   # (state_dim, 128), (1, 128)
    w2, b2 = lin(ks[2], ks[3], HIDDEN, HIDDEN)      # (128, 128), (1, 128)
    w3, b3 = lin(ks[4], ks[5], HIDDEN, 1)           # (128, 1),   (1, 1)
    w3_row = w3.reshape(1, HIDDEN)                  # (1, 128) row for fc3
    return (w1, b1, w2, b2, w3_row, b3)


def _choose_tiling(B, tb):
    """Pick (TB, Bp).

    TB is a multiple of 128 (lane-dense out rows).  When the grid has more
    than one step, TB is a multiple of 1024 so the out block's sublane dim
    (TB // 128) satisfies the (8, 128) divisibility rule.  For batches with
    enough work to split we keep >= 2 grid steps so v7x's two TensorCores
    both get a share (the extra step is negligible on single-TC v5e/v6e).
    """
    if B < 2 * 1024:
        TB = _round_up(max(B, 1), LANE)
        return TB, TB
    tb = max(1024, (tb // 1024) * 1024)
    n_steps = max(2, _cdiv(B, tb))
    TB = min(tb, _round_up(_cdiv(B, n_steps), 1024))
    Bp = _round_up(B, TB)
    return TB, Bp


def value_network_forward(x, params, tb=4096):
    """x: (B, state_dim) float32  ->  (B, 1) float32."""
    w1, b1, w2, b2, w3, b3 = params
    B, state_dim = x.shape

    TB, Bp = _choose_tiling(B, tb)
    if Bp != B:
        x = jnp.pad(x, ((0, Bp - B), (0, 0)))

    # Weights cast once to bf16 (tiny; VMEM-resident across all grid steps).
    w1_bf = w1.astype(jnp.bfloat16)
    w2_bf = w2.astype(jnp.bfloat16)

    rows = Bp // LANE            # lane-dense output rows
    trows = TB // LANE           # output rows per grid step

    out = pl.pallas_call(
        value_net_kernel,
        out_shape=jax.ShapeDtypeStruct((rows, LANE), jnp.float32),
        grid=(Bp // TB,),
        in_specs=[
            pl.BlockSpec((TB, state_dim), lambda i: (i, 0)),      # x (tiled)
            pl.BlockSpec((state_dim, HIDDEN), lambda i: (0, 0)),  # w1 (resident)
            pl.BlockSpec((1, HIDDEN), lambda i: (0, 0)),          # b1
            pl.BlockSpec((HIDDEN, HIDDEN), lambda i: (0, 0)),     # w2
            pl.BlockSpec((1, HIDDEN), lambda i: (0, 0)),          # b2
            pl.BlockSpec((1, HIDDEN), lambda i: (0, 0)),          # w3 row
            pl.BlockSpec((1, 1), lambda i: (0, 0)),               # b3
        ],
        out_specs=pl.BlockSpec((trows, LANE), lambda i: (i, 0)),
        compiler_params=pltpu.CompilerParams(
            dimension_semantics=("parallel",),
            vmem_limit_bytes=32 * 1024 * 1024),
    )(x, w1_bf, b1, w2_bf, b2, w3, b3)

    # Lane-dense (rows, 128) -> flat batch order -> (B, 1)  (torch .view(-1, 1)).
    return out.reshape(-1)[:B].reshape(-1, 1)


def value_network_ref(x, params):
    """Pure-JAX f32 reference for correctness check."""
    w1, b1, w2, b2, w3, b3 = params
    h1 = jnp.maximum(x @ w1 + b1, 0.0)
    h2 = jnp.maximum(h1 @ w2 + b2, 0.0)
    out = jnp.sum(h2 * w3, axis=-1, keepdims=True) + b3
    return out.reshape(-1, 1)


if __name__ == "__main__":
    key = jax.random.PRNGKey(0)
    k_param, k_x = jax.random.split(key)

    state_dim = 16
    batch = 8

    params = init_params(k_param, state_dim)
    x = jax.random.normal(k_x, (batch, state_dim), jnp.float32)

    value = value_network_forward(x, params)
    jax.block_until_ready(value)

    ref = value_network_ref(x, params)
    assert value.shape == (batch, 1), value.shape
    # bf16 matmul operands with f32 accumulation -> loosened tolerance.
    assert jnp.allclose(value, ref, atol=2e-2, rtol=2e-2), (
        jnp.max(jnp.abs(value - ref)))

    print("KERNEL_OK")
</pallas_src>

<mosaic_0001>
module attributes {stable_mosaic.version = 11 : i64} {
  func.func @value_net_kernel(%arg0: i32, %arg1: memref<128x16xf32, #tpu.memory_space<vmem>>, %arg2: memref<16x128xbf16, #tpu.memory_space<vmem>>, %arg3: memref<1x128xf32, #tpu.memory_space<vmem>>, %arg4: memref<128x128xbf16, #tpu.memory_space<vmem>>, %arg5: memref<1x128xf32, #tpu.memory_space<vmem>>, %arg6: memref<1x128xf32, #tpu.memory_space<vmem>>, %arg7: memref<1x1xf32, #tpu.memory_space<vmem>>, %arg8: memref<1x128xf32, #tpu.memory_space<vmem>>) attributes {dimension_semantics = [#tpu.dimension_semantics<parallel>], iteration_bounds = array<i64: 1>, scalar_prefetch = 0 : i64, scratch_operands = 0 : i64, tpu.core_type = #tpu.core_type<tc>, window_params = [{transform_indices = @transform_0, window_bounds = array<i64: 128, 16>}, {pipeline_mode = #tpu.pipeline_mode<synchronous>, transform_indices = @transform_1, window_bounds = array<i64: 16, 128>}, {pipeline_mode = #tpu.pipeline_mode<synchronous>, transform_indices = @transform_2, window_bounds = array<i64: 1, 128>}, {pipeline_mode = #tpu.pipeline_mode<synchronous>, transform_indices = @transform_3, window_bounds = array<i64: 128, 128>}, {pipeline_mode = #tpu.pipeline_mode<synchronous>, transform_indices = @transform_4, window_bounds = array<i64: 1, 128>}, {pipeline_mode = #tpu.pipeline_mode<synchronous>, transform_indices = @transform_5, window_bounds = array<i64: 1, 128>}, {pipeline_mode = #tpu.pipeline_mode<synchronous>, transform_indices = @transform_6, window_bounds = array<i64: 1, 1>}, {transform_indices = @transform_7, window_bounds = array<i64: 1, 128>}]} {
    %c0 = arith.constant 0 : index
    %c0_0 = arith.constant 0 : index
    %0 = vector.load %arg1[%c0, %c0_0] : memref<128x16xf32, #tpu.memory_space<vmem>>, vector<128x16xf32>
    %1 = arith.truncf %0 : vector<128x16xf32> to vector<128x16xbf16>
    %c0_1 = arith.constant 0 : index
    %c0_2 = arith.constant 0 : index
    %2 = vector.load %arg2[%c0_1, %c0_2] : memref<16x128xbf16, #tpu.memory_space<vmem>>, vector<16x128xbf16>
    %cst = arith.constant dense<0.000000e+00> : vector<128x128xf32>
    %3 = tpu.matmul %1, %2, %cst {dimension_numbers = #tpu.dot_dimension_numbers<[1], [0], [0], [1], [0, 0, 1, 1], [], []>} : vector<128x16xbf16>, vector<16x128xbf16>, vector<128x128xf32> -> vector<128x128xf32>
    %c0_3 = arith.constant 0 : index
    %c0_4 = arith.constant 0 : index
    %4 = vector.load %arg3[%c0_3, %c0_4] : memref<1x128xf32, #tpu.memory_space<vmem>>, vector<1x128xf32>
    %5 = vector.broadcast %4 : vector<1x128xf32> to vector<128x128xf32>
    %6 = arith.addf %3, %5 : vector<128x128xf32>
    %cst_5 = arith.constant 0.000000e+00 : f32
    %7 = vector.broadcast %cst_5 : f32 to vector<128x128xf32>
    %8 = arith.maximumf %6, %7 : vector<128x128xf32>
    %9 = arith.truncf %8 : vector<128x128xf32> to vector<128x128xbf16>
    %c0_6 = arith.constant 0 : index
    %c0_7 = arith.constant 0 : index
    %10 = vector.load %arg4[%c0_6, %c0_7] : memref<128x128xbf16, #tpu.memory_space<vmem>>, vector<128x128xbf16>
    %cst_8 = arith.constant dense<0.000000e+00> : vector<128x128xf32>
    %11 = tpu.matmul %9, %10, %cst_8 {dimension_numbers = #tpu.dot_dimension_numbers<[1], [0], [0], [1], [0, 0, 1, 1], [], []>} : vector<128x128xbf16>, vector<128x128xbf16>, vector<128x128xf32> -> vector<128x128xf32>
    %c0_9 = arith.constant 0 : index
    %c0_10 = arith.constant 0 : index
    %12 = vector.load %arg5[%c0_9, %c0_10] : memref<1x128xf32, #tpu.memory_space<vmem>>, vector<1x128xf32>
    %13 = vector.broadcast %12 : vector<1x128xf32> to vector<128x128xf32>
    %14 = arith.addf %11, %13 : vector<128x128xf32>
    %cst_11 = arith.constant 0.000000e+00 : f32
    %15 = vector.broadcast %cst_11 : f32 to vector<128x128xf32>
    %16 = arith.maximumf %14, %15 : vector<128x128xf32>
    %c0_12 = arith.constant 0 : index
    %c0_13 = arith.constant 0 : index
    %17 = vector.load %arg6[%c0_12, %c0_13] : memref<1x128xf32, #tpu.memory_space<vmem>>, vector<1x128xf32>
    %c0_14 = arith.constant 0 : index
    %c0_15 = arith.constant 0 : index
    %18 = vector.load %arg7[%c0_14, %c0_15] : memref<1x1xf32, #tpu.memory_space<vmem>>, vector<1x1xf32>
    %19 = tpu.transpose %16, [1, 0] : vector<128x128xf32> -> vector<128x128xf32>
    %cst_16 = arith.constant dense<0.000000e+00> : vector<1x128xf32>
    %20 = tpu.matmul %17, %19, %cst_16 {dimension_numbers = #tpu.dot_dimension_numbers<[1], [0], [0], [1], [0, 0, 1, 1], [], []>} : vector<1x128xf32>, vector<128x128xf32>, vector<1x128xf32> -> vector<1x128xf32>
    %21 = vector.broadcast %18 : vector<1x1xf32> to vector<1x128xf32>
    %22 = arith.addf %20, %21 : vector<1x128xf32>
    %c0_17 = arith.constant 0 : index
    %c0_18 = arith.constant 0 : index
    %23 = vector.load %arg8[%c0_17, %c0_18] : memref<1x128xf32, #tpu.memory_space<vmem>>, vector<1x128xf32>
    tpu.vector_store %arg8[%c0_17, %c0_18], %22 {strides = array<i32>} : memref<1x128xf32, #tpu.memory_space<vmem>>, vector<1x128xf32>,
    return
  }
  func.func @transform_0(%arg0: i32) -> (i32, i32) {
    %c0_i32 = arith.constant 0 : i32
    %c0_i32_0 = arith.constant 0 : i32
    return %arg0, %c0_i32 : i32, i32
  }
  func.func @transform_1(%arg0: i32) -> (i32, i32) {
    %c0_i32 = arith.constant 0 : i32
    %c0_i32_0 = arith.constant 0 : i32
    %c0_i32_1 = arith.constant 0 : i32
    return %c0_i32, %c0_i32_0 : i32, i32
  }
  func.func @transform_2(%arg0: i32) -> (i32, i32) {
    %c0_i32 = arith.constant 0 : i32
    %c0_i32_0 = arith.constant 0 : i32
    %c0_i32_1 = arith.constant 0 : i32
    return %c0_i32, %c0_i32_0 : i32, i32
  }
  func.func @transform_3(%arg0: i32) -> (i32, i32) {
    %c0_i32 = arith.constant 0 : i32
    %c0_i32_0 = arith.constant 0 : i32
    %c0_i32_1 = arith.constant 0 : i32
    return %c0_i32, %c0_i32_0 : i32, i32
  }
  func.func @transform_4(%arg0: i32) -> (i32, i32) {
    %c0_i32 = arith.constant 0 : i32
    %c0_i32_0 = arith.constant 0 : i32
    %c0_i32_1 = arith.constant 0 : i32
    return %c0_i32, %c0_i32_0 : i32, i32
  }
  func.func @transform_5(%arg0: i32) -> (i32, i32) {
    %c0_i32 = arith.constant 0 : i32
    %c0_i32_0 = arith.constant 0 : i32
    %c0_i32_1 = arith.constant 0 : i32
    return %c0_i32, %c0_i32_0 : i32, i32
  }
  func.func @transform_6(%arg0: i32) -> (i32, i32) {
    %c0_i32 = arith.constant 0 : i32
    %c0_i32_0 = arith.constant 0 : i32
    %c0_i32_1 = arith.constant 0 : i32
    return %c0_i32, %c0_i32_0 : i32, i32
  }
  func.func @transform_7(%arg0: i32) -> (i32, i32) {
    %c0_i32 = arith.constant 0 : i32
    %c0_i32_0 = arith.constant 0 : i32
    return %arg0, %c0_i32 : i32, i32
  }
}

</mosaic_0001>

<bundles_post_ra>
// kernel: tpu_custom_call.1
= control target key start
LH: loop header
LB: loop body
LE: loop exit
PB: predicated region body
PF: predicated region fallthrough
CT: control target
= control target key end

     0   :  { %s583_s0 = inlined_call_operand.vmem [shape: f32[128,16], index: 0, kind: input, shape index: {}]   ;;  %s584_s1 = inlined_call_operand.vmem [shape: bf16[16,128], index: 1, kind: input, shape index: {}]   ;;  %s585_s2 = inlined_call_operand.vmem [shape: f32[1,128], index: 2, kind: input, shape index: {}]   ;;  %s586_s3 = inlined_call_operand.vmem [shape: bf16[128,128], index: 3, kind: input, shape index: {}]   ;;  %s587_s4 = inlined_call_operand.vmem [shape: f32[1,128], index: 4, kind: input, shape index: {}]   ;;  %s588_s5 = inlined_call_operand.vmem [shape: f32[1,128], index: 5, kind: input, shape index: {}]   ;;  %s589_s6 = inlined_call_operand.<no memory space> [shape: f32[1,1], index: 6, kind: input, shape index: {}]   ;;  %s590_s7 = inlined_call_operand.hbm [shape: f32[1,128], index: 7, kind: output, shape index: {}]  }
   0x1   :  { %v12_v0 = vstv %s589_s6 }
   0x2   :  { %13 = vst [vmem:[#allocation2] sm:$0x1] %v12_v0 }
   0x3   :  { %v386_v1 = vld [vmem:[%s584_s1] sm:$0xff]  ;;  %v31_v3 = vld [vmem:[%s583_s0 + $0x8] sm:$0xff]  ;;  %vm66_vm0 = vcmask 130048  }
   0x4   :  { %v30_v2 = vld [vmem:[%s583_s0] sm:$0xff]  ;;  %v39_v6 = vld [vmem:[%s583_s0 + $0x48] sm:$0xff]  ;;  %98 = vmatpush.bf16.msra.mxu0 %v386_v1  ;;  %395 = vmatpush.bf16.msra.mxu2 %v386_v1 }
   0x5   :  { %v46_v4 = vpack.c.bf16 %v31_v3, %v30_v2  ;;  %v38_v5 = vld [vmem:[%s583_s0 + $0x40] sm:$0xff] }
   0x6   :  { %v50_v7 = vpack.c.bf16 %v39_v6, %v38_v5 }
   0x7   :  { %346 = vmatmul.msk.bf16.vlgmr.msra.gmra.mxu0 %vm66_vm0, %v46_v4 }
   0x8   :  { %350 = vmatmul.msk.bf16.vlgmr.msra.gmra.mxu2 %vm66_vm0, %v50_v7 }
   0x9   :  { %14 = vsyncpa [#allocation4], 0  ;;  %v32_v8 = vld [vmem:[%s583_s0 + $0x10] sm:$0xff]  ;;  %v33_v9 = vld [vmem:[%s583_s0 + $0x18] sm:$0xff]  ;;  %s444_s28 = smov [#allocation3]   ;;  %s333_s9 = sshll.u32 %s590_s7, 4  ;;  %s334_s9 = int_to_ptr.hbm [resolvable:$true] %s333_s9 }
   0xa   :  { %v40_v10 = vld [vmem:[%s583_s0 + $0x50] sm:$0xff]  ;;  %v41_v11 = vld [vmem:[%s583_s0 + $0x58] sm:$0xff]  ;;  %v47_v12 = vpack.c.bf16 %v33_v9, %v32_v8  ;;  %v392_v16 = vld [vmem:[%s586_s3 + $0x28] sm:$0xff]  ;;  %s331_s29 = sshll.u32 %s444_s28, 4  ;;  %s332_s29 = int_to_ptr.vmem [resolvable:$true] %s331_s29 }
   0xb   :  { %v51_v13 = vpack.c.bf16 %v41_v11, %v40_v10  ;;  %v394_v14 = vld [vmem:[%s586_s3 + $0x38] sm:$0xff]  ;;  %v393_v15 = vld [vmem:[%s586_s3 + $0x30] sm:$0xff]  ;;  %v34_v17 = vld [vmem:[%s583_s0 + $0x20] sm:$0xff] }
   0xc   :  { %232 = vmatpush.bf16.msrb.mxu0 %v394_v14  ;;  %396 = vmatpush.bf16.msra.mxu1 %v394_v14  ;;  %v35_v18 = vld [vmem:[%s583_s0 + $0x28] sm:$0xff]  ;;  %v42_v19 = vld [vmem:[%s583_s0 + $0x60] sm:$0xff]  ;;  %v36_v23 = vld [vmem:[%s583_s0 + $0x30] sm:$0xff] }
   0xd   :  { %397 = vmatpush.bf16.msra.mxu3 %v394_v14  ;;  %v43_v20 = vld [vmem:[%s583_s0 + $0x68] sm:$0xff]  ;;  %v48_v21 = vpack.c.bf16 %v35_v18, %v34_v17  ;;  %v37_v24 = vld [vmem:[%s583_s0 + $0x38] sm:$0xff]  ;;  %v44_v25 = vld [vmem:[%s583_s0 + $0x70] sm:$0xff] }
   0xe   :  { %v52_v22 = vpack.c.bf16 %v43_v20, %v42_v19  ;;  %v45_v26 = vld [vmem:[%s583_s0 + $0x78] sm:$0xff]  ;;  %v49_v27 = vpack.c.bf16 %v37_v24, %v36_v23  ;;  %v391_v29 = vld [vmem:[%s586_s3 + $0x20] sm:$0xff]  ;;  %v389_v31 = vld [vmem:[%s586_s3 + $0x10] sm:$0xff] }
   0xf   :  { %v53_v28 = vpack.c.bf16 %v45_v26, %v44_v25  ;;  %v390_v30 = vld [vmem:[%s586_s3 + $0x18] sm:$0xff]  ;;  %v388_v32 = vld [vmem:[%s586_s3 + $0x8] sm:$0xff]  ;;  %v387_v33 = vld [vmem:[%s586_s3] sm:$0xff] }
  0x10   :  { %233 = vmatpush.bf16.msrb.mxu0 %v393_v15  ;;  %398 = vmatpush.bf16.msra.mxu1 %v393_v15  ;;  %v415_v35 = vld [vmem:[%s585_s2] ss:$0 sm:$0xff] }
  0x11   :  { %399 = vmatpush.bf16.msra.mxu3 %v393_v15 }
  0x14   :  { %234 = vmatpush.bf16.msrb.mxu0 %v392_v16  ;;  %400 = vmatpush.bf16.msra.mxu1 %v392_v16 }
  0x15   :  { %401 = vmatpush.bf16.msra.mxu3 %v392_v16 }
  0x17   :  { %347 = vmatmul.msk.bf16.gmra.mxu0 %vm66_vm0, %v47_v12 }
  0x18   :  { %351 = vmatmul.msk.bf16.gmra.mxu2 %vm66_vm0, %v51_v13  ;;  %235 = vmatpush.bf16.msrb.mxu0 %v391_v29 }
  0x19   :  { %402 = vmatpush.bf16.msra.mxu1 %v391_v29  ;;  %403 = vmatpush.bf16.msra.mxu3 %v391_v29 }
  0x1c   :  { %236 = vmatpush.bf16.msrb.mxu0 %v390_v30 }
  0x1d   :  { %404 = vmatpush.bf16.msra.mxu1 %v390_v30  ;;  %405 = vmatpush.bf16.msra.mxu3 %v390_v30 }
  0x20   :  { %237 = vmatpush.bf16.msrb.mxu0 %v389_v31 }
  0x21   :  { %406 = vmatpush.bf16.msra.mxu1 %v389_v31  ;;  %407 = vmatpush.bf16.msra.mxu3 %v389_v31 }
  0x24   :  { %238 = vmatpush.bf16.msrb.mxu0 %v388_v32 }
  0x25   :  { %408 = vmatpush.bf16.msra.mxu1 %v388_v32  ;;  %409 = vmatpush.bf16.msra.mxu3 %v388_v32 }
  0x27   :  { %348 = vmatmul.msk.bf16.gmra.mxu0 %vm66_vm0, %v48_v21 }
  0x28   :  { %352 = vmatmul.msk.bf16.gmra.mxu2 %vm66_vm0, %v52_v22  ;;  %239 = vmatpush.bf16.msrb.mxu0 %v387_v33 }
  0x29   :  { %410 = vmatpush.bf16.msra.mxu1 %v387_v33  ;;  %411 = vmatpush.bf16.msra.mxu3 %v387_v33 }
  0x37   :  { %349 = vmatmul.msk.bf16.gmra.mxu0 %vm66_vm0, %v49_v27 }
  0x38   :  { %353 = vmatmul.msk.bf16.gmra.mxu2 %vm66_vm0, %v53_v28 }
  0x84   :  { %v100_v34 = vpop.f32.mrf.mxu0 }
  0x85   :  { %v101_v36 = vadd.f32 %v415_v35, %v100_v34 }
  0x87   :  { %v140_v40 = vmax.f32 %v101_v36, 0.0 }
  0x8b   :  { %v120_v37 = vpop.f32.mrf.mxu2 }
  0x8c   :  { %v121_v38 = vadd.f32 %v415_v35, %v120_v37  ;;  %v102_v39 = vpop.f32.mrf.mxu0 }
  0x8d   :  { %v103_v41 = vadd.f32 %v415_v35, %v102_v39 }
  0x8e   :  { %v148_v47 = vmax.f32 %v121_v38, 0.0 }
  0x8f   :  { %v141_v42 = vmax.f32 %v103_v41, 0.0 }
  0x91   :  { %v156_v43 = vpack.c.bf16 %v141_v42, %v140_v40 }
  0x93   :  { %v122_v44 = vpop.f32.mrf.mxu2  ;;  %240 = vmatmul.bf16.vlgmr.msrb.gmra.mxu0 %v156_v43 }
  0x94   :  { %v123_v45 = vadd.f32 %v415_v35, %v122_v44  ;;  %v105_v46 = vpop.f32.mrf.mxu0 }
  0x95   :  { %v106_v50 = vadd.f32 %v415_v35, %v105_v46 }
  0x96   :  { %v149_v48 = vmax.f32 %v123_v45, 0.0 }
  0x97   :  { %v142_v53 = vmax.f32 %v106_v50, 0.0 }
  0x98   :  { %v160_v49 = vpack.c.bf16 %v149_v48, %v148_v47 }
  0x9b   :  { %v125_v51 = vpop.f32.mrf.mxu2 }
  0x9c   :  { %v107_v52 = vpop.f32.mrf.mxu0  ;;  %v126_v56 = vadd.f32 %v415_v35, %v125_v51 }
  0x9d   :  { %v108_v54 = vadd.f32 %v415_v35, %v107_v52 }
  0x9e   :  { %v150_v61 = vmax.f32 %v126_v56, 0.0 }
  0x9f   :  { %v143_v55 = vmax.f32 %v108_v54, 0.0 }
  0xa1   :  { %v157_v57 = vpack.c.bf16 %v143_v55, %v142_v53 }
  0xa3   :  { %v127_v58 = vpop.f32.mrf.mxu2  ;;  %245 = vmatmul.bf16.vlgmr.msra.gmra.mxu1 %v157_v57 }
  0xa4   :  { %v128_v59 = vadd.f32 %v415_v35, %v127_v58  ;;  %v110_v60 = vpop.f32.mrf.mxu0 }
  0xa5   :  { %v111_v0 = vadd.f32 %v415_v35, %v110_v60 }
  0xa6   :  { %v151_v62 = vmax.f32 %v128_v59, 0.0 }
  0xa7   :  { %v144_v3 = vmax.f32 %v111_v0, 0.0 }
  0xa8   :  { %v161_v63 = vpack.c.bf16 %v151_v62, %v150_v61  ;;  %v298_v61 = vld [vmem:[#allocation2] sm:$0x1]  ;;  %v443_v62 = vmov 0  }
  0xa9   :  { %414 = vset.pattern.permute.xlu0 %v443_v62 }
  0xaa   :  { %265 = vmatmul.bf16.vlgmr.msra.gmra.mxu3 %v161_v63  ;;  %301 = vperm.xlu0 %414, %v298_v61  }
  0xab   :  { %v130_v1 = vpop.f32.mrf.mxu2 }
  0xac   :  { %v112_v2 = vpop.f32.mrf.mxu0  ;;  %v131_v6 = vadd.f32 %v415_v35, %v130_v1 }
  0xad   :  { %v113_v4 = vadd.f32 %v415_v35, %v112_v2 }
  0xae   :  { %v152_v11 = vmax.f32 %v131_v6, 0.0 }
  0xaf   :  { %v145_v5 = vmax.f32 %v113_v4, 0.0 }
  0xb1   :  { %v158_v7 = vpack.c.bf16 %v145_v5, %v144_v3 }
  0xb3   :  { %v132_v8 = vpop.f32.mrf.mxu2  ;;  %250 = vmatmul.bf16.gmra.mxu1 %v158_v7 }
  0xb4   :  { %v133_v9 = vadd.f32 %v415_v35, %v132_v8  ;;  %v115_v10 = vpop.f32.mrf.mxu0 }
  0xb5   :  { %v116_v14 = vadd.f32 %v415_v35, %v115_v10 }
  0xb6   :  { %v153_v12 = vmax.f32 %v133_v9, 0.0 }
  0xb7   :  { %v146_v17 = vmax.f32 %v116_v14, 0.0  ;;  %v297_v14 = vld [vmem:[%s588_s5] sm:$0x1] }
  0xb8   :  { %v162_v13 = vpack.c.bf16 %v153_v12, %v152_v11 }
  0xba   :  { %270 = vmatmul.bf16.gmra.mxu3 %v162_v13 }
  0xbb   :  { %v135_v15 = vpop.f32.mrf.mxu2 }
  0xbc   :  { %v117_v16 = vpop.f32.mrf.mxu0  ;;  %v136_v20 = vadd.f32 %v415_v35, %v135_v15 }
  0xbd   :  { %v118_v18 = vadd.f32 %v415_v35, %v117_v16 }
  0xbe   :  { %v154_v24 = vmax.f32 %v136_v20, 0.0 }
  0xbf   :  { %v147_v19 = vmax.f32 %v118_v18, 0.0 }
  0xc1   :  { %v159_v21 = vpack.c.bf16 %v147_v19, %v146_v17 }
  0xc3   :  { %v137_v22 = vpop.f32.mrf.mxu2  ;;  %255 = vmatmul.bf16.gmra.mxu1 %v159_v21 }
  0xc4   :  { %v138_v23 = vadd.f32 %v415_v35, %v137_v22  ;;  %v416_v35 = vld [vmem:[%s587_s4] ss:$0 sm:$0xff] }
  0xc6   :  { %v155_v25 = vmax.f32 %v138_v23, 0.0 }
  0xc8   :  { %v163_v26 = vpack.c.bf16 %v155_v25, %v154_v24 }
  0xca   :  { %275 = vmatmul.bf16.gmra.mxu3 %v163_v26 }
  0xd3   :  { %260 = vmatmul.bf16.gmra.mxu1 %v160_v49 }
 0x110   :  { %v241_v1 = vpop.f32.mrf.mxu0 }
 0x111   :  { %v242_v11 = vadd.f32 %v416_v35, %v241_v1 }
 0x113   :  { %v281_v13 = vmax.f32 %v242_v11, 0.0 }
 0x118   :  { %v243_v8 = vpop.f32.mrf.mxu0 }
 0x119   :  { %v244_v9 = vadd.f32 %v416_v35, %v243_v8 }
 0x11b   :  { %v282_v12 = vmax.f32 %v244_v9, 0.0 }
 0x11c   :  { %v302_v15 = vpop.permute.xlu0 %301 }
 0x11d   :  { %v304_v16 = vperm.slane %v302_v15, 0 }
 0x120   :  { %v246_v27 = vpop.f32.mrf.mxu1 }
 0x121   :  { %v247_v6 = vadd.f32 %v416_v35, %v246_v27 }
 0x123   :  { %v283_v10 = vmax.f32 %v247_v6, 0.0 }
 0x128   :  { %v248_v28 = vpop.f32.mrf.mxu1 }
 0x129   :  { %v249_v4 = vadd.f32 %v416_v35, %v248_v28 }
 0x12b   :  { %v284_v7 = vmax.f32 %v249_v4, 0.0 }
 0x12d   :  { %v266_v29 = vpop.f32.mrf.mxu3 }
 0x12e   :  { %v267_v50 = vadd.f32 %v416_v35, %v266_v29 }
 0x130   :  { %v251_v31 = vpop.f32.mrf.mxu1  ;;  %v291_v53 = vmax.f32 %v267_v50, 0.0 }
 0x131   :  { %v252_v2 = vadd.f32 %v416_v35, %v251_v31 }
 0x133   :  { %v285_v5 = vmax.f32 %v252_v2, 0.0 }
 0x135   :  { %v268_v30 = vpop.f32.mrf.mxu3 }
 0x136   :  { %v269_v48 = vadd.f32 %v416_v35, %v268_v30 }
 0x138   :  { %v253_v33 = vpop.f32.mrf.mxu1  ;;  %v292_v51 = vmax.f32 %v269_v48, 0.0 }
 0x139   :  { %v254_v63 = vadd.f32 %v416_v35, %v253_v33 }
 0x13b   :  { %v286_v3 = vmax.f32 %v254_v63, 0.0 }
 0x13d   :  { %v271_v32 = vpop.f32.mrf.mxu3 }
 0x13e   :  { %v272_v46 = vadd.f32 %v416_v35, %v271_v32 }
 0x140   :  { %v256_v36 = vpop.f32.mrf.mxu1  ;;  %v293_v49 = vmax.f32 %v272_v46, 0.0 }
 0x141   :  { %v257_v59 = vadd.f32 %v416_v35, %v256_v36 }
 0x143   :  { %v287_v0 = vmax.f32 %v257_v59, 0.0 }
 0x145   :  { %v273_v34 = vpop.f32.mrf.mxu3 }
 0x146   :  { %v274_v43 = vadd.f32 %v416_v35, %v273_v34 }
 0x148   :  { %v258_v38 = vpop.f32.mrf.mxu1  ;;  %v294_v47 = vmax.f32 %v274_v43, 0.0 }
 0x149   :  { %v259_v57 = vadd.f32 %v416_v35, %v258_v38 }
 0x14b   :  { %v288_v60 = vmax.f32 %v259_v57, 0.0 }
 0x14d   :  { %v276_v37 = vpop.f32.mrf.mxu3 }
 0x14e   :  { %v277_v41 = vadd.f32 %v416_v35, %v276_v37 }
 0x150   :  { %v295_v44 = vmax.f32 %v277_v41, 0.0  ;;  %v261_v45 = vpop.f32.mrf.mxu1 }
 0x151   :  { %v262_v55 = vadd.f32 %v416_v35, %v261_v45 }
 0x153   :  { %v289_v58 = vmax.f32 %v262_v55, 0.0 }
 0x155   :  { %v278_v39 = vpop.f32.mrf.mxu3 }
 0x156   :  { %v279_v40 = vadd.f32 %v416_v35, %v278_v39 }
 0x158   :  { %v296_v42 = vmax.f32 %v279_v40, 0.0  ;;  %v263_v52 = vpop.f32.mrf.mxu1 }
 0x159   :  { %v264_v54 = vadd.f32 %v416_v35, %v263_v52 }
 0x15a   :  { %305 = vmatpush.xpose.msrb.mxu2 %v296_v42 }
 0x15b   :  { %v290_v56 = vmax.f32 %v264_v54, 0.0 }
 0x15e   :  { %306 = vmatpush.xpose.msrb.mxu2 %v295_v44 }
 0x162   :  { %307 = vmatpush.xpose.msrb.mxu2 %v294_v47 }
 0x166   :  { %308 = vmatpush.xpose.msrb.mxu2 %v293_v49 }
 0x16a   :  { %309 = vmatpush.xpose.msrb.mxu2 %v292_v51 }
 0x16e   :  { %310 = vmatpush.xpose.msrb.mxu2 %v291_v53 }
 0x172   :  { %311 = vmatpush.xpose.msrb.mxu2 %v290_v56 }
 0x176   :  { %312 = vmatpush.xpose.msrb.mxu2 %v289_v58 }
 0x17a   :  { %313 = vmatpush.xpose.msrb.mxu2 %v288_v60 }
 0x17e   :  { %314 = vmatpush.xpose.msrb.mxu2 %v287_v0 }
 0x182   :  { %315 = vmatpush.xpose.msrb.mxu2 %v286_v3 }
 0x186   :  { %316 = vmatpush.xpose.msrb.mxu2 %v285_v5 }
 0x18a   :  { %317 = vmatpush.xpose.msrb.mxu2 %v284_v7 }
 0x18e   :  { %318 = vmatpush.xpose.msrb.mxu2 %v283_v10 }
 0x192   :  { %319 = vmatpush.xpose.msrb.mxu2 %v282_v12 }
 0x196   :  { %320 = vmatpush.xpose.msrb.mxu2 %v281_v13 }
 0x199   :  { %321 = vmatmul.f32.vlgmr.msrb.gmra.mxu2 %v297_v14 }
 0x21c   :  { %v322_v17 = vpop.f32.mrf.mxu2 }
 0x21d   :  { %v323_v18 = vadd.f32 %v322_v17, %v304_v16 }
 0x21f   :  { %325 = vst [vmem:[#allocation3] sm:$0x1] %v323_v18 }
 0x220   :  { %336 = dma.vmem_to_hbm [thread:$0]  %s332_s29, 16, %s334_s9, [#allocation4]  }
 0x221   :  { %441 = dma.done.wait [#allocation4], 16  }
 0x222   :  { %442 = vsyncadd [#allocation4], 4294967280 }
 0x223   :  { %341 = vsyncpa [#allocation4], 1 }

</bundles_post_ra>
